<compile_context>
chip_gen: v6e
topology: v6e:2x2x1
jax: 0.10.0
libtpu: 0.0.40
codegen_flags: <defaults>
</compile_context>

<pallas_src>
import jax
import jax.numpy as jnp
from jax.experimental import pallas as pl
from jax.experimental.pallas import tpu as pltpu

_NEG_BIG = -1e30   # bias on padded logit lanes -> exp() == 0 exactly (f32 bias)
_LANE = 128


def _disc_kernel(x_ref, w1_ref, b1_ref, w2_ref, b2_ref, wp_ref, bp_ref, o_ref):
    # x arrives as f32 straight from HBM; cast to the weight dtype (bf16) on
    # the VPU here (free filler on a mem-bound kernel) instead of writing a
    # separate bf16 copy of x to HBM in the wrapper.
    x = x_ref[...].astype(w1_ref.dtype)

    # Layer 1: Linear -> ReLU   (dropout = identity in eval mode)
    h = jnp.dot(x, w1_ref[...], preferred_element_type=jnp.float32) + b1_ref[...]
    h = jnp.maximum(h, 0.0)

    # Layer 2: hidden2 with BN1 folded in -> ReLU
    h = jnp.dot(h.astype(w2_ref.dtype), w2_ref[...],
                preferred_element_type=jnp.float32) + b2_ref[...]
    h = jnp.maximum(h, 0.0)

    # Head: predict with BN2 folded in, padded to 128 lanes -> softmax.
    # Padded lanes carry bias = -1e30 => exp == 0, so the softmax over the
    # padded width equals the 2-class softmax exactly.
    z = jnp.dot(h.astype(wp_ref.dtype), wp_ref[...],
                preferred_element_type=jnp.float32) + bp_ref[...]
    m = jnp.max(z, axis=1, keepdims=True)
    e = jnp.exp(z - m)
    denom = jnp.sum(e, axis=1, keepdims=True)
    # Exact reciprocal (EUP op, off the critical path on a mem-bound kernel);
    # keeps row sums == 1 to f32 precision before the bf16 output cast.
    p = e * pl.reciprocal(denom, approx=False)
    o_ref[...] = p.astype(o_ref.dtype)


def _round_up(n, m):
    return ((n + m - 1) // m) * m


def _num_tensorcores():
    """Best-effort TensorCore-per-chip query (v7x=2, v5e/v6e=1)."""
    try:
        info = pltpu.get_tpu_info()
        for attr in ("num_cores", "num_tensorcores", "tensorcore_count",
                     "core_count"):
            n = getattr(info, attr, None)
            if isinstance(n, int) and n > 0:
                return n
    except Exception:
        pass
    return 1


def _prepare_params(params, use_bf16=True, lane=_LANE):
    """Fold BN affines into the following Linear, zero-pad all widths to 128
    lanes (exact), pad the head bias with -1e30, cast weights to bf16."""
    (w1, b1, s1, t1, w2, b2, s2, t2, wp, bp) = params

    # Fold batchnorm1 into hidden2, batchnorm2 into predict (exact, eval mode).
    w2f = s1.reshape(-1, 1) * w2
    b2f = t1 @ w2 + b2
    wpf = s2.reshape(-1, 1) * wp
    bpf = t2 @ wp + bp

    n_cls = wpf.shape[1]
    d1 = w1.shape[1]          # hidden width 1 (64)
    d2 = w2f.shape[1]         # hidden width 2 (64)

    # Zero-pad hidden widths to 128 lanes.  Exact: padded layer-1 outputs are
    # relu(0 + 0) = 0, padded W2 input rows are zero (no contribution), padded
    # W2 output columns give relu(0) = 0, padded Wp input rows are zero.
    w1p = jnp.pad(w1, ((0, 0), (0, lane - d1)))
    b1p = jnp.pad(b1, ((0, 0), (0, lane - d1)))
    w2p = jnp.pad(w2f, ((0, lane - w2f.shape[0]), (0, lane - d2)))
    b2p = jnp.pad(b2f, ((0, 0), (0, lane - d2)))
    wpp = jnp.pad(wpf, ((0, lane - wpf.shape[0]), (0, lane - n_cls)))
    bpp = jnp.pad(bpf, ((0, 0), (0, lane - n_cls)), constant_values=_NEG_BIG)

    wdt = jnp.bfloat16 if use_bf16 else jnp.float32
    # Biases stay f32 so the -1e30 padded-lane bias is exact.
    kparams = (w1p.astype(wdt), b1p.astype(jnp.float32),
               w2p.astype(wdt), b2p.astype(jnp.float32),
               wpp.astype(wdt), bpp.astype(jnp.float32))
    return kparams, n_cls


def discriminator_compas_aw(x, params, *, tile_b=1024, use_bf16=True,
                            out_bf16=True, num_tensorcores=None):
    """x: [B, input_length] float32. Returns softmax probabilities [B, 2] f32."""
    B, L = x.shape
    (w1, b1, w2, b2, wp, bp), n_cls = _prepare_params(params, use_bf16)
    n_pad = wp.shape[1]                                   # 128
    out_dtype = jnp.bfloat16 if out_bf16 else jnp.float32

    if num_tensorcores is None:
        num_tensorcores = _num_tensorcores()

    # Batch tile: multiple of 16 (covers bf16 sublane packing and f32's 8),
    # capped at tile_b.  Only on multi-TensorCore chips (v7x) do we force
    # enough grid steps (>= 2 per core) for the "parallel" batch axis to shard
    # and still double-buffer per core; on 1-TC chips one big tile is best.
    pack = 16
    b_pad = _round_up(B, pack)
    tb = _round_up(max(pack, min(tile_b, b_pad)), pack)
    if num_tensorcores >= 2:
        want_steps = 2 * num_tensorcores
        if b_pad >= want_steps * pack and pl.cdiv(b_pad, tb) < want_steps:
            tb = _round_up(pl.cdiv(b_pad, want_steps), pack)
    num_tiles = pl.cdiv(b_pad, tb)
    b_full = num_tiles * tb

    # x goes in as f32 (cast to bf16 happens inside the kernel).  Zero-pad the
    # batch only when genuinely ragged (single pass).
    xk = x if x.dtype == jnp.float32 else x.astype(jnp.float32)
    if b_full != B:
        xk = jnp.pad(xk, ((0, b_full - B), (0, 0)))

    def nbytes(a):
        return int(a.size) * jnp.dtype(a.dtype).itemsize

    # Grid-invariant weight/bias blocks (constant index map).  For very large
    # input_length, single-buffer W1 (it never changes) to save VMEM.
    w1_single = nbytes(w1) > (2 << 20)

    def const_spec(a, single=False):
        if single:
            return pl.BlockSpec(a.shape, lambda i: (0, 0),
                                pipeline_mode=pl.Buffered(1))
        return pl.BlockSpec(a.shape, lambda i: (0, 0))

    # VMEM budget computed from actual (double-buffered) buffer sizes.
    x_tile_bytes = tb * L * 4
    out_tile_bytes = tb * n_pad * jnp.dtype(out_dtype).itemsize
    w_bytes = sum(nbytes(a) for a in (w1, b1, w2, b2, wp, bp))
    vmem_need = 2 * (x_tile_bytes + out_tile_bytes) + 2 * w_bytes
    vmem_limit = int(min(64 << 20, max(8 << 20, int(vmem_need * 1.5) + (2 << 20))))

    cost = pl.CostEstimate(
        flops=2 * b_full * (L * _LANE + _LANE * _LANE + _LANE * _LANE),
        transcendentals=b_full * n_pad,
        bytes_accessed=b_full * L * 4 + w_bytes
        + b_full * n_pad * jnp.dtype(out_dtype).itemsize,
    )

    out = pl.pallas_call(
        _disc_kernel,
        out_shape=jax.ShapeDtypeStruct((b_full, n_pad), out_dtype),
        grid_spec=pltpu.PrefetchScalarGridSpec(
            num_scalar_prefetch=0,
            grid=(num_tiles,),
            in_specs=[
                pl.BlockSpec((tb, L), lambda i: (i, 0)),     # x tile (f32)
                const_spec(w1, w1_single), const_spec(b1),
                const_spec(w2), const_spec(b2),
                const_spec(wp), const_spec(bp),
            ],
            out_specs=pl.BlockSpec((tb, n_pad), lambda i: (i, 0)),
        ),
        compiler_params=pltpu.CompilerParams(
            # On v7x, if a trace ever shows one core idle, switch this axis to
            # pltpu.CORE_PARALLEL; "parallel" is the portable default.
            dimension_semantics=("parallel",),
            vmem_limit_bytes=vmem_limit,
        ),
        cost_estimate=cost,
    )(xk, w1, b1, w2, b2, wp, bp)

    return out[:B, :n_cls].astype(jnp.float32)


def init_params(key, input_length, dim1=64, dim2=64, finaldim=64, n_cls=2,
                eps=1e-5):
    """Deterministic synthetic parameters matching the module's shapes."""
    ks = jax.random.split(key, 8)

    def linear(kw, kb, fan_in, fan_out):
        bound = 1.0 / jnp.sqrt(fan_in)
        w = jax.random.uniform(kw, (fan_in, fan_out), jnp.float32, -bound, bound)
        b = jax.random.uniform(kb, (1, fan_out), jnp.float32, -bound, bound)
        return w, b

    w1, b1 = linear(ks[0], ks[1], input_length, dim1)
    w2, b2 = linear(ks[2], ks[3], dim2, finaldim)        # self.hidden2
    wp, bp = linear(ks[4], ks[5], finaldim, n_cls)       # self.predict

    # Non-trivial eval-mode BatchNorm1d stats folded to scale/shift.
    def bn_fold(k, dim):
        kg, kb2, km, kv = jax.random.split(k, 4)
        gamma = 1.0 + 0.1 * jax.random.normal(kg, (1, dim), jnp.float32)
        beta = 0.1 * jax.random.normal(kb2, (1, dim), jnp.float32)
        r_mean = 0.1 * jax.random.normal(km, (1, dim), jnp.float32)
        r_var = jnp.abs(1.0 + 0.1 * jax.random.normal(kv, (1, dim), jnp.float32))
        scale = gamma / jnp.sqrt(r_var + eps)
        shift = beta - r_mean * scale
        return scale, shift

    s1, t1 = bn_fold(ks[6], dim1)
    s2, t2 = bn_fold(ks[7], finaldim)
    return (w1, b1, s1, t1, w2, b2, s2, t2, wp, bp)


def _reference_f32(x, params):
    """Original (un-folded) f32 semantics of the PyTorch forward (eval mode)."""
    (w1, b1, s1, t1, w2, b2, s2, t2, wp, bp) = params
    h = jnp.maximum(x @ w1 + b1, 0.0) * s1 + t1
    h = jnp.maximum(h @ w2 + b2, 0.0) * s2 + t2
    return jax.nn.softmax(h @ wp + bp, axis=1)


def _reference_matched(x, kparams, n_cls, out_dtype=jnp.bfloat16):
    """Same folded/padded/cast compute path as the kernel, in plain jnp."""
    (w1, b1, w2, b2, wp, bp) = kparams
    xk = x.astype(w1.dtype)
    h = jnp.maximum(jnp.dot(xk, w1, preferred_element_type=jnp.float32) + b1, 0.0)
    h = jnp.maximum(jnp.dot(h.astype(w2.dtype), w2,
                            preferred_element_type=jnp.float32) + b2, 0.0)
    z = jnp.dot(h.astype(wp.dtype), wp,
                preferred_element_type=jnp.float32) + bp
    p = jax.nn.softmax(z, axis=1)[:, :n_cls]
    return p.astype(out_dtype).astype(jnp.float32)


if __name__ == "__main__":
    key = jax.random.PRNGKey(0)
    k_x, k_p = jax.random.split(key)

    # Small shapes; batch deliberately NOT a multiple of 16 so the ragged
    # zero-padding path is exercised.
    B, INPUT_LEN = 50, 23
    x = jax.random.normal(k_x, (B, INPUT_LEN), jnp.float32)
    params = init_params(k_p, INPUT_LEN)

    out = discriminator_compas_aw(x, params)
    out = jax.block_until_ready(out)
    assert out.shape == (B, 2)
    assert out.dtype == jnp.float32

    kparams, n_cls = _prepare_params(params, use_bf16=True)
    ref_matched = _reference_matched(x, kparams, n_cls)   # same bf16 path
    ref_f32 = _reference_f32(x, params)                   # original semantics

    assert jnp.allclose(out, ref_matched, atol=5e-3, rtol=5e-3), \
        "mismatch vs matched (folded/bf16) reference"
    assert jnp.allclose(out, ref_f32, atol=5e-2, rtol=5e-2), \
        "mismatch vs original f32 reference"
    assert jnp.allclose(jnp.sum(out, axis=1), 1.0, atol=1e-2), \
        "softmax rows must sum to ~1"

    print("KERNEL_OK")
</pallas_src>

<mosaic_0001>
module attributes {stable_mosaic.version = 11 : i64} {
  func.func @_disc_kernel(%arg0: i32, %arg1: memref<64x23xf32, #tpu.memory_space<vmem>>, %arg2: memref<23x128xbf16, #tpu.memory_space<vmem>>, %arg3: memref<1x128xf32, #tpu.memory_space<vmem>>, %arg4: memref<128x128xbf16, #tpu.memory_space<vmem>>, %arg5: memref<1x128xf32, #tpu.memory_space<vmem>>, %arg6: memref<128x128xbf16, #tpu.memory_space<vmem>>, %arg7: memref<1x128xf32, #tpu.memory_space<vmem>>, %arg8: memref<64x128xbf16, #tpu.memory_space<vmem>>) attributes {dimension_semantics = [#tpu.dimension_semantics<parallel>], iteration_bounds = array<i64: 1>, scalar_prefetch = 0 : i64, scratch_operands = 0 : i64, tpu.core_type = #tpu.core_type<tc>, window_params = [{transform_indices = @transform_0, window_bounds = array<i64: 64, 23>}, {pipeline_mode = #tpu.pipeline_mode<synchronous>, transform_indices = @transform_1, window_bounds = array<i64: 23, 128>}, {pipeline_mode = #tpu.pipeline_mode<synchronous>, transform_indices = @transform_2, window_bounds = array<i64: 1, 128>}, {pipeline_mode = #tpu.pipeline_mode<synchronous>, transform_indices = @transform_3, window_bounds = array<i64: 128, 128>}, {pipeline_mode = #tpu.pipeline_mode<synchronous>, transform_indices = @transform_4, window_bounds = array<i64: 1, 128>}, {pipeline_mode = #tpu.pipeline_mode<synchronous>, transform_indices = @transform_5, window_bounds = array<i64: 128, 128>}, {pipeline_mode = #tpu.pipeline_mode<synchronous>, transform_indices = @transform_6, window_bounds = array<i64: 1, 128>}, {transform_indices = @transform_7, window_bounds = array<i64: 64, 128>}]} {
    %c0 = arith.constant 0 : index
    %c0_0 = arith.constant 0 : index
    %0 = vector.load %arg1[%c0, %c0_0] : memref<64x23xf32, #tpu.memory_space<vmem>>, vector<64x23xf32>
    %1 = arith.truncf %0 : vector<64x23xf32> to vector<64x23xbf16>
    %c0_1 = arith.constant 0 : index
    %c0_2 = arith.constant 0 : index
    %2 = vector.load %arg2[%c0_1, %c0_2] : memref<23x128xbf16, #tpu.memory_space<vmem>>, vector<23x128xbf16>
    %cst = arith.constant dense<0.000000e+00> : vector<64x128xf32>
    %3 = tpu.matmul %1, %2, %cst {dimension_numbers = #tpu.dot_dimension_numbers<[1], [0], [0], [1], [0, 0, 1, 1], [], []>} : vector<64x23xbf16>, vector<23x128xbf16>, vector<64x128xf32> -> vector<64x128xf32>
    %c0_3 = arith.constant 0 : index
    %c0_4 = arith.constant 0 : index
    %4 = vector.load %arg3[%c0_3, %c0_4] : memref<1x128xf32, #tpu.memory_space<vmem>>, vector<1x128xf32>
    %5 = vector.broadcast %4 : vector<1x128xf32> to vector<64x128xf32>
    %6 = arith.addf %3, %5 : vector<64x128xf32>
    %cst_5 = arith.constant 0.000000e+00 : f32
    %7 = vector.broadcast %cst_5 : f32 to vector<64x128xf32>
    %8 = arith.maximumf %6, %7 : vector<64x128xf32>
    %9 = arith.truncf %8 : vector<64x128xf32> to vector<64x128xbf16>
    %c0_6 = arith.constant 0 : index
    %c0_7 = arith.constant 0 : index
    %10 = vector.load %arg4[%c0_6, %c0_7] : memref<128x128xbf16, #tpu.memory_space<vmem>>, vector<128x128xbf16>
    %cst_8 = arith.constant dense<0.000000e+00> : vector<64x128xf32>
    %11 = tpu.matmul %9, %10, %cst_8 {dimension_numbers = #tpu.dot_dimension_numbers<[1], [0], [0], [1], [0, 0, 1, 1], [], []>} : vector<64x128xbf16>, vector<128x128xbf16>, vector<64x128xf32> -> vector<64x128xf32>
    %c0_9 = arith.constant 0 : index
    %c0_10 = arith.constant 0 : index
    %12 = vector.load %arg5[%c0_9, %c0_10] : memref<1x128xf32, #tpu.memory_space<vmem>>, vector<1x128xf32>
    %13 = vector.broadcast %12 : vector<1x128xf32> to vector<64x128xf32>
    %14 = arith.addf %11, %13 : vector<64x128xf32>
    %cst_11 = arith.constant 0.000000e+00 : f32
    %15 = vector.broadcast %cst_11 : f32 to vector<64x128xf32>
    %16 = arith.maximumf %14, %15 : vector<64x128xf32>
    %17 = arith.truncf %16 : vector<64x128xf32> to vector<64x128xbf16>
    %c0_12 = arith.constant 0 : index
    %c0_13 = arith.constant 0 : index
    %18 = vector.load %arg6[%c0_12, %c0_13] : memref<128x128xbf16, #tpu.memory_space<vmem>>, vector<128x128xbf16>
    %cst_14 = arith.constant dense<0.000000e+00> : vector<64x128xf32>
    %19 = tpu.matmul %17, %18, %cst_14 {dimension_numbers = #tpu.dot_dimension_numbers<[1], [0], [0], [1], [0, 0, 1, 1], [], []>} : vector<64x128xbf16>, vector<128x128xbf16>, vector<64x128xf32> -> vector<64x128xf32>
    %c0_15 = arith.constant 0 : index
    %c0_16 = arith.constant 0 : index
    %20 = vector.load %arg7[%c0_15, %c0_16] : memref<1x128xf32, #tpu.memory_space<vmem>>, vector<1x128xf32>
    %21 = vector.broadcast %20 : vector<1x128xf32> to vector<64x128xf32>
    %22 = arith.addf %19, %21 : vector<64x128xf32>
    %cst_17 = arith.constant dense<0xFF800000> : vector<64xf32>
    %23 = vector.multi_reduction <maximumf>, %22, %cst_17 [1] : vector<64x128xf32> to vector<64xf32>
    %24 = vector.shape_cast %23 : vector<64xf32> to vector<64x1xf32>
    %25 = vector.broadcast %24 : vector<64x1xf32> to vector<64x128xf32>
    %26 = arith.subf %22, %25 : vector<64x128xf32>
    %27 = math.exp %26 : vector<64x128xf32>
    %cst_18 = arith.constant dense<0.000000e+00> : vector<64xf32>
    %28 = vector.multi_reduction <add>, %27, %cst_18 [1] : vector<64x128xf32> to vector<64xf32>
    %29 = vector.shape_cast %28 : vector<64xf32> to vector<64x1xf32>
    %30 = tpu.reciprocal %29 : vector<64x1xf32> -> vector<64x1xf32>
    %31 = vector.broadcast %30 : vector<64x1xf32> to vector<64x128xf32>
    %32 = arith.mulf %27, %31 : vector<64x128xf32>
    %33 = arith.truncf %32 : vector<64x128xf32> to vector<64x128xbf16>
    %c0_19 = arith.constant 0 : index
    %c0_20 = arith.constant 0 : index
    %34 = vector.load %arg8[%c0_19, %c0_20] : memref<64x128xbf16, #tpu.memory_space<vmem>>, vector<64x128xbf16>
    tpu.vector_store %arg8[%c0_19, %c0_20], %33 {strides = array<i32>} : memref<64x128xbf16, #tpu.memory_space<vmem>>, vector<64x128xbf16>,
    return
  }
  func.func @transform_0(%arg0: i32) -> (i32, i32) {
    %c0_i32 = arith.constant 0 : i32
    %c0_i32_0 = arith.constant 0 : i32
    return %arg0, %c0_i32 : i32, i32
  }
  func.func @transform_1(%arg0: i32) -> (i32, i32) {
    %c0_i32 = arith.constant 0 : i32
    %c0_i32_0 = arith.constant 0 : i32
    %c0_i32_1 = arith.constant 0 : i32
    return %c0_i32, %c0_i32_0 : i32, i32
  }
  func.func @transform_2(%arg0: i32) -> (i32, i32) {
    %c0_i32 = arith.constant 0 : i32
    %c0_i32_0 = arith.constant 0 : i32
    %c0_i32_1 = arith.constant 0 : i32
    return %c0_i32, %c0_i32_0 : i32, i32
  }
  func.func @transform_3(%arg0: i32) -> (i32, i32) {
    %c0_i32 = arith.constant 0 : i32
    %c0_i32_0 = arith.constant 0 : i32
    %c0_i32_1 = arith.constant 0 : i32
    return %c0_i32, %c0_i32_0 : i32, i32
  }
  func.func @transform_4(%arg0: i32) -> (i32, i32) {
    %c0_i32 = arith.constant 0 : i32
    %c0_i32_0 = arith.constant 0 : i32
    %c0_i32_1 = arith.constant 0 : i32
    return %c0_i32, %c0_i32_0 : i32, i32
  }
  func.func @transform_5(%arg0: i32) -> (i32, i32) {
    %c0_i32 = arith.constant 0 : i32
    %c0_i32_0 = arith.constant 0 : i32
    %c0_i32_1 = arith.constant 0 : i32
    return %c0_i32, %c0_i32_0 : i32, i32
  }
  func.func @transform_6(%arg0: i32) -> (i32, i32) {
    %c0_i32 = arith.constant 0 : i32
    %c0_i32_0 = arith.constant 0 : i32
    %c0_i32_1 = arith.constant 0 : i32
    return %c0_i32, %c0_i32_0 : i32, i32
  }
  func.func @transform_7(%arg0: i32) -> (i32, i32) {
    %c0_i32 = arith.constant 0 : i32
    %c0_i32_0 = arith.constant 0 : i32
    return %arg0, %c0_i32 : i32, i32
  }
}

</mosaic_0001>

<bundles_post_ra>
// kernel: tpu_custom_call.1
= control target key start
LH: loop header
LB: loop body
LE: loop exit
PB: predicated region body
PF: predicated region fallthrough
CT: control target
= control target key end

     0   :  { %12 = vsyncpa [#allocation3], 0  ;;  %s960_s0 = inlined_call_operand.vmem [shape: f32[64,23], index: 0, kind: input, shape index: {}]   ;;  %s961_s1 = inlined_call_operand.vmem [shape: bf16[23,128], index: 1, kind: input, shape index: {}]   ;;  %s962_s2 = inlined_call_operand.vmem [shape: f32[1,128], index: 2, kind: input, shape index: {}]   ;;  %s963_s3 = inlined_call_operand.vmem [shape: bf16[128,128], index: 3, kind: input, shape index: {}]   ;;  %s964_s4 = inlined_call_operand.vmem [shape: f32[1,128], index: 4, kind: input, shape index: {}]   ;;  %s965_s5 = inlined_call_operand.hbm [shape: bf16[128,128], index: 5, kind: input, shape index: {}]   ;;  %s966_s6 = inlined_call_operand.vmem [shape: f32[1,128], index: 6, kind: input, shape index: {}]   ;;  %s967_s7 = inlined_call_operand.hbm [shape: bf16[64,128], index: 7, kind: output, shape index: {}]  }
   0x1   :  { %13 = vsyncpa [#allocation4], 0  ;;  %s836_s24 = smov [#allocation2]  }
   0x2   :  { %s29_s25 = sshll.u32 %s836_s24, 4  ;;  %s30_s25 = int_to_ptr.vmem [resolvable:$true] %s29_s25 }
   0x3   :  { %s800_s26 = scalar_lea.vmem %s30_s25, 1024  ;;  %p805_p1 = scmp.lt.s32.totalorder %s30_s25, %s30_s25 }
   0x4   :  { %p801_p0 = scmp.ne.s32.totalorder %s30_s25, %s800_s26  ;;  %p806_p2 = scmp.lt.s32.totalorder %s800_s26, %s800_s26 }
   0x6   :  { %p807_p3 = por %p806_p2, %p805_p1 }
   0x8   :  { %p808_p4 = pnand %p807_p3, %p801_p0 }
   0xa   :  { %811 = shalt.err (!%p808_p4)
}
   0xb   :  { %s837_s27 = smov 64   ;;  %s838_s28 = smov 4  }
   0xc   :  { %35 = dma.hbm_to_vmem [thread:$0]  %s965_s5, 1024, %s30_s25, [#allocation3], %s837_s27, %s837_s27, %s838_s28  }
   0xd   :  { %832 = dma.done.wait [#allocation3], 1024  }
   0xe   :  { %833 = vsyncadd [#allocation3], 4294966272  ;;  %vm86_vm0 = vcmask 1042432   ;;  %vm87_vm1 = vcmask 1043456   ;;  %v839_v0 = vmov 65535   ;;  %v42_v4 = vld [vmem:[%s960_s0] sm:$0xff] }
   0xf   :  { %v88_v1 = vsel %vm86_vm0, 4294967295, %v839_v0  ;;  %v742_v3 = vld [vmem:[%s961_s1 + $0x8] ss:$0 sps:$4 sm:$0xff]   ;;  %v743_v6 = vld [vmem:[%s961_s1] sm:$0xff]   ;;  %vm73_vm2 = vcmask 187392   ;;  %v44_v9 = vld [vmem:[%s960_s0 + $0x10] sm:$0xff] }
  0x10   :  { %v89_v2 = vsel %vm87_vm1, %v88_v1, 0  ;;  %v43_v7 = vld [vmem:[%s960_s0 + $0x8] sm:$0xff]  ;;  %v45_v10 = vld [vmem:[%s960_s0 + $0x18] sm:$0xff]  ;;  %v46_v11 = vld [vmem:[%s960_s0 + $0x20] sm:$0xff] }
  0x11   :  { %v91_v5 = vand.u32 %v742_v3, %v89_v2  ;;  %v50_v8 = vpack.c.bf16 %v43_v7, %v42_v4  ;;  %v47_v12 = vld [vmem:[%s960_s0 + $0x28] sm:$0xff]  ;;  %v744_v13 = vld [vmem:[%s963_s3 + $0x38] sm:$0xff]   ;;  %v745_v14 = vld [vmem:[%s963_s3 + $0x30] sm:$0xff]   ;;  %v51_v15 = vpack.c.bf16 %v45_v10, %v44_v9 }
  0x12   :  { %689 = vmatprep.subr.bf16.mxu1 %v744_v13  ;;  %v52_v16 = vpack.c.bf16 %v47_v12, %v46_v11  ;;  %v746_v17 = vld [vmem:[%s963_s3 + $0x28] sm:$0xff]   ;;  %v48_v18 = vld [vmem:[%s960_s0 + $0x30] sm:$0xff]  ;;  %v49_v19 = vld [vmem:[%s960_s0 + $0x38] sm:$0xff] }
  0x13   :  { %677 = vmatprep.subr.bf16.mxu0 %v91_v5  ;;  %681 = vmatprep.mubr.msk.bf16.mxu0 %vm73_vm2, %v50_v8  ;;  %v747_v20 = vld [vmem:[%s963_s3 + $0x20] sm:$0xff]   ;;  %v53_v21 = vpack.c.bf16 %v49_v19, %v48_v18  ;;  %v748_v22 = vld [vmem:[%s963_s3 + $0x18] sm:$0xff]   ;;  %v749_v23 = vld [vmem:[%s963_s3 + $0x10] sm:$0xff]  }
  0x14   :  { %678 = vmatpush3.bf16.msra.mxu0 %v91_v5  ;;  %690 = vmatpush3.bf16.msra.mxu1 %v744_v13  ;;  %v750_v24 = vld [vmem:[%s963_s3 + $0x8] sm:$0xff]   ;;  %v751_v25 = vld [vmem:[%s963_s3] sm:$0xff]   ;;  %v752_v26 = vld [vmem:[#allocation2 + $0x38] sm:$0xff]  }
  0x15   :  { %679 = vmatprep.subr.bf16.mxu0 %v743_v6  ;;  %691 = vmatprep.subr.bf16.mxu1 %v745_v14  ;;  %v753_v27 = vld [vmem:[#allocation2 + $0x30] sm:$0xff]   ;;  %v754_v28 = vld [vmem:[#allocation2 + $0x28] sm:$0xff]   ;;  %v755_v29 = vld [vmem:[#allocation2 + $0x20] sm:$0xff]  }
  0x16   :  { %v756_v30 = vld [vmem:[#allocation2 + $0x18] sm:$0xff]   ;;  %v583_v33 = vld [vmem:[%s962_s2] ss:$0 sm:$0xff]  ;;  %v757_v60 = vld [vmem:[#allocation2 + $0x10] sm:$0xff]  }
  0x17   :  { %v758_v61 = vld [vmem:[#allocation2 + $0x8] sm:$0xff]   ;;  %v759_v62 = vld [vmem:[#allocation2] sm:$0xff]  }
  0x18   :  { %680 = vmatpush3.bf16.msra.mxu0 %v743_v6  ;;  %692 = vmatpush3.bf16.msra.mxu1 %v745_v14  ;;  %v590_v1 = vld [vmem:[%s964_s4] ss:$0 sm:$0xff] }
  0x19   :  { %693 = vmatprep.subr.bf16.mxu1 %v746_v17  ;;  %713 = vmatprep.subr.bf16.mxu0 %v752_v26 }
  0x1b   :  { %682 = vmatmul.mubr.msk.bf16.vlgmr.msra.gmra.mxu0 %vm73_vm2, %v51_v15 }
  0x1c   :  { %685 = vmatprep.mubr.msk.bf16.mxu0 %vm73_vm2, %v52_v16  ;;  %694 = vmatpush3.bf16.msra.mxu1 %v746_v17 }
  0x1d   :  { %695 = vmatprep.subr.bf16.mxu1 %v747_v20  ;;  %714 = vmatpush3.bf16.msra.mxu0 %v752_v26 }
  0x1e   :  { %715 = vmatprep.subr.bf16.mxu0 %v753_v27 }
  0x20   :  { %696 = vmatpush3.bf16.msra.mxu1 %v747_v20 }
  0x21   :  { %697 = vmatprep.subr.bf16.mxu1 %v748_v22  ;;  %716 = vmatpush3.bf16.msra.mxu0 %v753_v27 }
  0x22   :  { %717 = vmatprep.subr.bf16.mxu0 %v754_v28 }
  0x23   :  { %686 = vmatmul.mubr.msk.bf16.gmra.mxu0 %vm73_vm2, %v53_v21 }
  0x24   :  { %698 = vmatpush3.bf16.msra.mxu1 %v748_v22 }
  0x25   :  { %699 = vmatprep.subr.bf16.mxu1 %v749_v23  ;;  %718 = vmatpush3.bf16.msra.mxu0 %v754_v28  ;;  %v599_v28 = vld [vmem:[%s966_s6] ss:$0 sm:$0xff]  ;;  %s840_s6 = smov [#allocation5]  }
  0x26   :  { %719 = vmatprep.subr.bf16.mxu0 %v755_v29  ;;  %s571_s21 = sshll.u32 %s840_s6, 4  ;;  %s572_s21 = int_to_ptr.vmem [resolvable:$true] %s571_s21 }
  0x27   :  { %s812_s22 = scalar_lea.vmem %s572_s21, 512  ;;  %p817_p6 = scmp.lt.s32.totalorder %s572_s21, %s572_s21 }
  0x28   :  { %700 = vmatpush3.bf16.msra.mxu1 %v749_v23  ;;  %p813_p5 = scmp.ne.s32.totalorder %s572_s21, %s812_s22  ;;  %p818_p7 = scmp.lt.s32.totalorder %s812_s22, %s812_s22 }
  0x29   :  { %701 = vmatprep.subr.bf16.mxu1 %v750_v24  ;;  %720 = vmatpush3.bf16.msra.mxu0 %v755_v29 }
  0x2a   :  { %721 = vmatprep.subr.bf16.mxu0 %v756_v30  ;;  %p819_p8 = por %p818_p7, %p817_p6 }
  0x2c   :  { %702 = vmatpush3.bf16.msra.mxu1 %v750_v24  ;;  %p820_p9 = pnand %p819_p8, %p813_p5 }
  0x2d   :  { %703 = vmatprep.subr.bf16.mxu1 %v751_v25  ;;  %722 = vmatpush3.bf16.msra.mxu0 %v756_v30 }
  0x2e   :  { %723 = vmatprep.subr.bf16.mxu0 %v757_v60 }
  0x30   :  { %704 = vmatpush3.bf16.msra.mxu1 %v751_v25 }
  0x31   :  { %724 = vmatpush3.bf16.msra.mxu0 %v757_v60 }
  0x32   :  { %725 = vmatprep.subr.bf16.mxu0 %v758_v61 }
  0x35   :  { %726 = vmatpush3.bf16.msra.mxu0 %v758_v61 }
  0x36   :  { %727 = vmatprep.subr.bf16.mxu0 %v759_v62 }
  0x39   :  { %728 = vmatpush3.bf16.msra.mxu0 %v759_v62 }
  0xdb   :  { %v683_v31 = vpop.f32.mrf.mxu0 }
  0xdc   :  { %v136_v37 = vadd.f32 %v683_v31, %v583_v33 }
  0xdd   :  { %v127_v32 = vpop.f32.mrf.mxu0 }
  0xde   :  { %v128_v35 = vadd.f32 %v583_v33, %v127_v32  ;;  %v160_v44 = vmax.f32 %v136_v37, 0.0 }
  0xdf   :  { %v684_v34 = vpop.f32.mrf.mxu0 }
  0xe0   :  { %v139_v36 = vadd.f32 %v684_v34, %v583_v33  ;;  %v158_v42 = vmax.f32 %v128_v35, 0.0 }
  0xe1   :  { %v130_v38 = vpop.f32.mrf.mxu0 }
  0xe2   :  { %v131_v39 = vadd.f32 %v583_v33, %v130_v38  ;;  %v161_v40 = vmax.f32 %v139_v36, 0.0 }
  0xe3   :  { %v687_v41 = vpop.f32.mrf.mxu0 }
  0xe4   :  { %v159_v43 = vmax.f32 %v131_v39, 0.0  ;;  %v167_v47 = vpack.c.bf16 %v161_v40, %v160_v44  ;;  %v152_v51 = vadd.f32 %v687_v41, %v583_v33 }
  0xe5   :  { %v143_v45 = vpop.f32.mrf.mxu0 }
  0xe6   :  { %v166_v46 = vpack.c.bf16 %v159_v43, %v158_v42  ;;  %v144_v49 = vadd.f32 %v583_v33, %v143_v45  ;;  %v164_v57 = vmax.f32 %v152_v51, 0.0 }
  0xe7   :  { %v688_v48 = vpop.f32.mrf.mxu0 }
  0xe8   :  { %v155_v50 = vadd.f32 %v688_v48, %v583_v33  ;;  %705 = vmatprep.mubr.bf16.mxu1 %v166_v46  ;;  %v162_v55 = vmax.f32 %v144_v49, 0.0 }
  0xe9   :  { %v146_v52 = vpop.f32.mrf.mxu0  ;;  %706 = vmatmul.mubr.bf16.vlgmr.msra.gmra.mxu1 %v167_v47 }
  0xea   :  { %v147_v53 = vadd.f32 %v583_v33, %v146_v52  ;;  %v165_v54 = vmax.f32 %v155_v50, 0.0 }
  0xec   :  { %v163_v56 = vmax.f32 %v147_v53, 0.0  ;;  %v169_v59 = vpack.c.bf16 %v165_v54, %v164_v57 }
  0xee   :  { %v168_v58 = vpack.c.bf16 %v163_v56, %v162_v55 }
  0xf0   :  { %709 = vmatprep.mubr.bf16.mxu1 %v168_v58 }
  0xf1   :  { %710 = vmatmul.mubr.bf16.gmra.mxu1 %v169_v59 }
 0x1a9   :  { %v707_v63 = vpop.f32.mrf.mxu1 }
 0x1aa   :  { %v284_v5 = vadd.f32 %v707_v63, %v590_v1 }
 0x1ab   :  { %v275_v0 = vpop.f32.mrf.mxu1 }
 0x1ac   :  { %v276_v3 = vadd.f32 %v590_v1, %v275_v0  ;;  %v308_v12 = vmax.f32 %v284_v5, 0.0 }
 0x1ad   :  { %v708_v2 = vpop.f32.mrf.mxu1 }
 0x1ae   :  { %v287_v4 = vadd.f32 %v708_v2, %v590_v1  ;;  %v306_v10 = vmax.f32 %v276_v3, 0.0 }
 0x1af   :  { %v278_v6 = vpop.f32.mrf.mxu1 }
 0x1b0   :  { %v279_v7 = vadd.f32 %v590_v1, %v278_v6  ;;  %v309_v8 = vmax.f32 %v287_v4, 0.0 }
 0x1b1   :  { %v711_v9 = vpop.f32.mrf.mxu1 }
 0x1b2   :  { %v307_v11 = vmax.f32 %v279_v7, 0.0  ;;  %v315_v15 = vpack.c.bf16 %v309_v8, %v308_v12  ;;  %v300_v19 = vadd.f32 %v711_v9, %v590_v1 }
 0x1b3   :  { %v291_v13 = vpop.f32.mrf.mxu1 }
 0x1b4   :  { %v314_v14 = vpack.c.bf16 %v307_v11, %v306_v10  ;;  %v292_v17 = vadd.f32 %v590_v1, %v291_v13  ;;  %v312_v25 = vmax.f32 %v300_v19, 0.0 }
 0x1b5   :  { %v712_v16 = vpop.f32.mrf.mxu1 }
 0x1b6   :  { %v303_v18 = vadd.f32 %v712_v16, %v590_v1  ;;  %729 = vmatprep.mubr.bf16.mxu0 %v314_v14  ;;  %v310_v23 = vmax.f32 %v292_v17, 0.0 }
 0x1b7   :  { %v294_v20 = vpop.f32.mrf.mxu1  ;;  %730 = vmatmul.mubr.bf16.vlgmr.msra.gmra.mxu0 %v315_v15 }
 0x1b8   :  { %v295_v21 = vadd.f32 %v590_v1, %v294_v20  ;;  %v313_v22 = vmax.f32 %v303_v18, 0.0 }
 0x1ba   :  { %v311_v24 = vmax.f32 %v295_v21, 0.0  ;;  %v317_v27 = vpack.c.bf16 %v313_v22, %v312_v25 }
 0x1bc   :  { %v316_v26 = vpack.c.bf16 %v311_v24, %v310_v23 }
 0x1be   :  { %733 = vmatprep.mubr.bf16.mxu0 %v316_v26 }
 0x1bf   :  { %734 = vmatmul.mubr.bf16.gmra.mxu0 %v317_v27 }
 0x277   :  { %v731_v29 = vpop.f32.mrf.mxu0 }
 0x278   :  { %v432_v30 = vadd.f32 %v731_v29, %v599_v28 }
 0x279   :  { %v423_v31 = vpop.f32.mrf.mxu0 }
 0x27a   :  { %v424_v32 = vadd.f32 %v599_v28, %v423_v31  ;;  %458 = vmax.xlane.f32.xlu1 %v432_v30 }
 0x27b   :  { %v732_v33 = vpop.f32.mrf.mxu0 }
 0x27c   :  { %v435_v34 = vadd.f32 %v732_v33, %v599_v28  ;;  %454 = vmax.xlane.f32.xlu0 %v424_v32 }
 0x27d   :  { %v426_v35 = vpop.f32.mrf.mxu0 }
 0x27e   :  { %v427_v36 = vadd.f32 %v599_v28, %v426_v35  ;;  %460 = vmax.xlane.f32.xlu1 %v435_v34 }
 0x27f   :  { %v735_v37 = vpop.f32.mrf.mxu0 }
 0x280   :  { %456 = vmax.xlane.f32.xlu0 %v427_v36  ;;  %v448_v42 = vadd.f32 %v735_v37, %v599_v28 }
 0x281   :  { %v439_v38 = vpop.f32.mrf.mxu0 }
 0x282   :  { %v440_v39 = vadd.f32 %v599_v28, %v439_v38 }
 0x283   :  { %v736_v40 = vpop.f32.mrf.mxu0 }
 0x284   :  { %462 = vmax.xlane.f32.xlu0 %v440_v39  ;;  %v451_v44 = vadd.f32 %v736_v40, %v599_v28 }
 0x285   :  { %v442_v41 = vpop.f32.mrf.mxu0 }
 0x286   :  { %v443_v43 = vadd.f32 %v599_v28, %v442_v41 }
 0x288   :  { %464 = vmax.xlane.f32.xlu1 %v443_v43  ;;  %466 = vmax.xlane.f32.xlu0 %v448_v42 }
 0x28c   :  { %468 = vmax.xlane.f32.xlu1 %v451_v44 }
 0x303   :  { %v459_v45 = vpop.xlane.xlu1 %458 }
 0x304   :  { %v472_v46 = vsub.f32 %v432_v30, %v459_v45 }
 0x305   :  { %v455_v47 = vpop.xlane.xlu0 %454 }
 0x306   :  { %v482_v48 = vmul.f32 1.442695, %v472_v46  ;;  %v470_v49 = vsub.f32 %v424_v32, %v455_v47 }
 0x307   :  { %v461_v50 = vpop.xlane.xlu1 %460 }
 0x308   :  { %760 = vpow2.f32 %v482_v48  ;;  %v478_v51 = vmul.f32 1.442695, %v470_v49  ;;  %v473_v52 = vsub.f32 %v435_v34, %v461_v50 }
 0x309   :  { %v457_v53 = vpop.xlane.xlu0 %456 }
 0x30a   :  { %v484_v54 = vmul.f32 1.442695, %v473_v52  ;;  %v471_v55 = vsub.f32 %v427_v36, %v457_v53  ;;  %762 = vpow2.f32 %v478_v51 }
 0x30c   :  { %764 = vpow2.f32 %v484_v54  ;;  %v480_v56 = vmul.f32 1.442695, %v471_v55 }
 0x30d   :  { %v463_v57 = vpop.xlane.xlu0 %462 }
 0x30e   :  { %v474_v58 = vsub.f32 %v440_v39, %v463_v57  ;;  %766 = vpow2.f32 %v480_v56 }
 0x310   :  { %v486_v59 = vmul.f32 1.442695, %v474_v58 }
 0x311   :  { %v465_v60 = vpop.xlane.xlu1 %464  ;;  %v467_v61 = vpop.xlane.xlu0 %466 }
 0x312   :  { %768 = vpow2.f32 %v486_v59  ;;  %v475_v62 = vsub.f32 %v443_v43, %v465_v60  ;;  %v476_v63 = vsub.f32 %v448_v42, %v467_v61 }
 0x314   :  { %v488_v0 = vmul.f32 1.442695, %v475_v62  ;;  %v490_v1 = vmul.f32 1.442695, %v476_v63 }
 0x315   :  { %v761_v2 = vpop.eup %760  ;;  %v469_v3 = vpop.xlane.xlu1 %468 }
 0x316   :  { %770 = vpow2.f32 %v488_v0  ;;  %v477_v4 = vsub.f32 %v451_v44, %v469_v3  ;;  %498 = vadd.xlane.f32.xlu0 %v761_v2 }
 0x317   :  { %772 = vpow2.f32 %v490_v1  ;;  %v763_v5 = vpop.eup %762 }
 0x318   :  { %v492_v6 = vmul.f32 1.442695, %v477_v4 }
 0x319   :  { %v765_v7 = vpop.eup %764 }
 0x31a   :  { %774 = vpow2.f32 %v492_v6  ;;  %500 = vadd.xlane.f32.xlu1 %v765_v7  ;;  %494 = vadd.xlane.f32.xlu0 %v763_v5 }
 0x31b   :  { %v767_v8 = vpop.eup %766 }
 0x31e   :  { %496 = vadd.xlane.f32.xlu1 %v767_v8 }
 0x31f   :  { %v769_v9 = vpop.eup %768 }
 0x320   :  { %502 = vadd.xlane.f32.xlu0 %v769_v9 }
 0x323   :  { %v771_v10 = vpop.eup %770 }
 0x324   :  { %v773_v11 = vpop.eup %772  ;;  %504 = vadd.xlane.f32.xlu1 %v771_v10 }
 0x325   :  { %506 = vadd.xlane.f32.xlu0 %v773_v11 }
 0x327   :  { %v775_v12 = vpop.eup %774 }
 0x328   :  { %508 = vadd.xlane.f32.xlu1 %v775_v12 }
 0x39f   :  { %v499_v13 = vpop.xlane.xlu0 %498 }
 0x3a0   :  { %776 = vrcp.f32 %v499_v13 }
 0x3a3   :  { %v501_v14 = vpop.xlane.xlu1 %500  ;;  %v495_v15 = vpop.xlane.xlu0 %494 }
 0x3a4   :  { %778 = vrcp.f32 %v501_v14 }
 0x3a5   :  { %780 = vrcp.f32 %v495_v15 }
 0x3a7   :  { %v497_v16 = vpop.xlane.xlu1 %496 }
 0x3a8   :  { %782 = vrcp.f32 %v497_v16 }
 0x3a9   :  { %v503_v17 = vpop.xlane.xlu0 %502 }
 0x3aa   :  { %784 = vrcp.f32 %v503_v17 }
 0x3ad   :  { %v505_v18 = vpop.xlane.xlu1 %504  ;;  %v777_v20 = vpop.eup %776 }
 0x3ae   :  { %786 = vrcp.f32 %v505_v18  ;;  %v507_v19 = vpop.xlane.xlu0 %506  ;;  %v520_v23 = vmul.f32 %v777_v20, %v761_v2 }
 0x3af   :  { %788 = vrcp.f32 %v507_v19 }
 0x3b1   :  { %v779_v21 = vpop.eup %778  ;;  %v509_v22 = vpop.xlane.xlu1 %508 }
 0x3b2   :  { %790 = vrcp.f32 %v509_v22  ;;  %v521_v24 = vmul.f32 %v779_v21, %v765_v7  ;;  %v781_v25 = vpop.eup %780 }
 0x3b3   :  { %v518_v28 = vmul.f32 %v781_v25, %v763_v5 }
 0x3b4   :  { %v632_v26 = vpack.c.bf16 %v521_v24, %v520_v23 }
 0x3b5   :  { %v783_v27 = vpop.eup %782 }
 0x3b6   :  { %v519_v29 = vmul.f32 %v783_v27, %v767_v8  ;;  %644 = vst [vmem:[#allocation5 + $0x8] sm:$0xff] %v632_v26  }
 0x3b7   :  { %v785_v31 = vpop.eup %784 }
 0x3b8   :  { %v627_v30 = vpack.c.bf16 %v519_v29, %v518_v28  ;;  %v522_v33 = vmul.f32 %v785_v31, %v769_v9 }
 0x3ba   :  { %628 = vst [vmem:[#allocation5] sm:$0xff] %v627_v30  }
 0x3bb   :  { %v787_v32 = vpop.eup %786 }
 0x3bc   :  { %v523_v34 = vmul.f32 %v787_v32, %v771_v10  ;;  %v789_v35 = vpop.eup %788 }
 0x3bd   :  { %v524_v38 = vmul.f32 %v789_v35, %v773_v11 }
 0x3be   :  { %v637_v36 = vpack.c.bf16 %v523_v34, %v522_v33 }
 0x3bf   :  { %v791_v37 = vpop.eup %790 }
 0x3c0   :  { %v525_v39 = vmul.f32 %v791_v37, %v775_v12  ;;  %645 = vst [vmem:[#allocation5 + $0x10] sm:$0xff] %v637_v36  }
 0x3c2   :  { %v642_v40 = vpack.c.bf16 %v525_v39, %v524_v38 }
 0x3c4   :  { %646 = vst [vmem:[#allocation5 + $0x18] sm:$0xff] %v642_v40  }
 0x3c5   :  { %823 = shalt.err (!%p820_p9)
}
 0x3c6   :  { %577 = dma.vmem_to_hbm [thread:$0]  %s572_s21, 512, %s967_s7, [#allocation4], %s837_s27, %s837_s27, %s838_s28  }
 0x3c7   :  { %834 = dma.done.wait [#allocation4], 512  }
 0x3c8   :  { %835 = vsyncadd [#allocation4], 4294966784 }
 0x3c9   :  { %581 = vsyncpa [#allocation3], 1 }
 0x3ca   :  { %582 = vsyncpa [#allocation4], 1 }

</bundles_post_ra>
